<compile_context>
chip_gen: v6e
topology: v6e:2x2x1
jax: 0.10.0
libtpu: 0.0.40
codegen_flags: <defaults>
</compile_context>

<pallas_src>
import functools
import math

import jax
import jax.numpy as jnp
from jax.experimental import pallas as pl
from jax.experimental.pallas import tpu as pltpu

_LANES = 128
_SUBLANES = 8
_CHUNK_ROWS = 512  # per-chunk reduction size inside a block (256 KiB f32 temp)


def _round_up(x, m):
    return ((x + m - 1) // m) * m


def _chip_config():
    """(num_core_splits, max_block_rows) for the current TPU generation."""
    try:
        kind = jax.devices()[0].device_kind.lower()
    except Exception:  # pragma: no cover - defensive, keeps CPU interpret OK
        kind = ""
    # 8192-row f32 tiles = 4 MiB/input; 2 inputs x 2 buffers = 16 MiB, which
    # fits the 32 MiB scoped-VMEM default on v6e/v7x.  Older chips (v5e etc.)
    # default to a 16 MiB scoped limit -> cap at 4096 rows (8 MiB buffered).
    max_rows = 8192 if ("v6" in kind or "v7" in kind) else 4096
    # Only v7x has 2 TensorCores per chip; on 1-TC chips a leading "parallel"
    # axis is a pure sequential split (smaller blocks, extra tail waste).
    num_splits = 2 if "v7" in kind else 1
    return num_splits, max_rows


def _adv_loss_kernel(p_ref, h_ref, o_ref, *, block_rows, chunk_rows,
                     blocks_per_split, valid_rows, need_mask):
    """Accumulate sum(p*log(p) + log(1-h)) into a lane-dense (8,128) partial."""
    c = pl.program_id(0)
    i = pl.program_id(1)

    @pl.when(i == 0)
    def _():
        o_ref[...] = jnp.zeros_like(o_ref)

    num_chunks = block_rows // chunk_rows

    if need_mask:
        # Global row index of the first row of this (logical) block; rows at or
        # beyond `valid_rows` are garbage (partial tile / clamped block) and are
        # replaced by the neutral values p=1, h=0 so they contribute exactly 0.
        block_start = (c * blocks_per_split + i) * block_rows
        sub_iota = jax.lax.broadcasted_iota(jnp.int32, (chunk_rows, _LANES), 0)

    def body(k, acc):
        off = pl.multiple_of(k * chunk_rows, chunk_rows)
        p = p_ref[pl.ds(off, chunk_rows), :].astype(jnp.float32)
        h = h_ref[pl.ds(off, chunk_rows), :].astype(jnp.float32)
        if need_mask:
            row_ids = block_start + off + sub_iota
            valid = row_ids < valid_rows
            p = jnp.where(valid, p, 1.0)
            h = jnp.where(valid, h, 0.0)
        # lambda_adv is a constant scalar -> hoisted to the wrapper.  The
        # scalar constant 1.0 replaces the ones_like broadcast of the
        # reference.  Two EUP log pushes per element; everything else is VPU.
        term = p * jnp.log(p) + jnp.log(1.0 - h)
        # Reduce across groups of 8 sublane rows only: pure VPU adds across
        # vregs, no cross-lane XLU reduce and no masked single-lane store.
        return acc + term.reshape(chunk_rows // _SUBLANES, _SUBLANES,
                                  _LANES).sum(axis=0)

    acc = jax.lax.fori_loop(0, num_chunks, body,
                            jnp.zeros((_SUBLANES, _LANES), jnp.float32),
                            unroll=True)
    o_ref[...] += acc


def adversarial_loss(input_p, input_h, lambda_adv):
    """Pallas implementation of Adversarial_Loss.forward. Returns a scalar f32."""
    assert input_p.shape == input_h.shape
    total = math.prod(input_p.shape)
    num_splits, max_block_rows = _chip_config()

    rows = -(-total // _LANES)
    padded_total = rows * _LANES

    p_flat = input_p.reshape(-1)
    h_flat = input_h.reshape(-1)
    pad = padded_total - total
    if pad:
        # At most 127 neutral elements: p = 1 -> 1*log(1) = 0 ; h = 0 -> log(1) = 0.
        # (The common total % 128 == 0 case is a pure reshape: zero extra copies.)
        p_flat = jnp.concatenate([p_flat, jnp.ones((pad,), p_flat.dtype)])
        h_flat = jnp.concatenate([h_flat, jnp.zeros((pad,), h_flat.dtype)])

    p2d = p_flat.reshape(rows, _LANES)
    h2d = h_flat.reshape(rows, _LANES)

    # Tile sizing: biggest block that fits the per-generation VMEM budget,
    # multiple of the reduction chunk when large, multiple of 8 sublanes always.
    rows_per_split = max(_SUBLANES, -(-rows // num_splits))
    block_rows = min(max_block_rows, _round_up(rows_per_split, _SUBLANES))
    if block_rows >= _CHUNK_ROWS:
        block_rows = min(_round_up(block_rows, _CHUNK_ROWS), max_block_rows)
        chunk_rows = _CHUNK_ROWS
    else:
        chunk_rows = block_rows

    total_blocks = -(-rows // block_rows)
    blocks_per_split = -(-total_blocks // num_splits)
    grid = (num_splits, blocks_per_split)
    # Only mask in-kernel when the grid does not cover the rows exactly.
    need_mask = (num_splits * blocks_per_split * block_rows) != rows
    last_block = total_blocks - 1

    kernel = functools.partial(
        _adv_loss_kernel, block_rows=block_rows, chunk_rows=chunk_rows,
        blocks_per_split=blocks_per_split, valid_rows=rows,
        need_mask=need_mask)

    if need_mask:
        # Clamp so an overshooting split never issues an out-of-range block DMA;
        # its rows are >= `rows`, so the in-kernel mask zeroes its contribution.
        def in_map(c, i):
            return (jnp.minimum(c * blocks_per_split + i, last_block), 0)
    else:
        def in_map(c, i):
            return (c * blocks_per_split + i, 0)

    itemsize = jnp.dtype(input_p.dtype).itemsize
    cost = pl.CostEstimate(
        flops=4 * total,
        transcendentals=2 * total,
        bytes_accessed=2 * total * itemsize
        + num_splits * _SUBLANES * _LANES * 4)

    partials = pl.pallas_call(
        kernel,
        out_shape=jax.ShapeDtypeStruct((num_splits * _SUBLANES, _LANES),
                                       jnp.float32),
        grid_spec=pltpu.PrefetchScalarGridSpec(
            num_scalar_prefetch=0,
            grid=grid,
            in_specs=[
                pl.BlockSpec((block_rows, _LANES), in_map),
                pl.BlockSpec((block_rows, _LANES), in_map),
            ],
            # One lane-dense (8,128) partial per core-split, resident across the
            # "arbitrary" reduction axis (same block index for every i).
            out_specs=pl.BlockSpec((_SUBLANES, _LANES), lambda c, i: (c, 0)),
        ),
        compiler_params=pltpu.CompilerParams(
            dimension_semantics=("parallel", "arbitrary"),
        ),
        cost_estimate=cost,
    )(p2d, h2d)

    # Final cross-lane reduce (1024 * num_splits floats) + constant scale in JAX.
    return lambda_adv * jnp.sum(partials)


def adversarial_loss_ref(input_p, input_h, lambda_adv):
    dis_p = input_p * jnp.log(input_p)
    dis_h = jnp.log(jnp.ones_like(input_h) - input_h)
    return jnp.sum(lambda_adv * (dis_h + dis_p))


if __name__ == "__main__":
    key = jax.random.PRNGKey(0)
    k1, k2 = jax.random.split(key)

    # NCHW inputs, values in (0, 1) so log(p) and log(1 - h) are finite
    # (matches the probability-map semantics of the adversarial loss).
    shape = (2, 4, 16, 16)
    input_p = jax.nn.sigmoid(jax.random.normal(k1, shape, dtype=jnp.float32))
    input_h = jax.nn.sigmoid(jax.random.normal(k2, shape, dtype=jnp.float32))
    lambda_adv = 0.5

    out = adversarial_loss(input_p, input_h, lambda_adv)
    out = jax.block_until_ready(out)

    ref = adversarial_loss_ref(input_p, input_h, lambda_adv)
    assert jnp.allclose(out, ref, rtol=1e-5, atol=1e-3), (out, ref)

    print("KERNEL_OK")
</pallas_src>

<mosaic_0001>
module attributes {stable_mosaic.version = 11 : i64} {
  func.func @_adv_loss_kernel(%arg0: i32, %arg1: i32, %arg2: memref<16x128xf32, #tpu.memory_space<vmem>>, %arg3: memref<16x128xf32, #tpu.memory_space<vmem>>, %arg4: memref<8x128xf32, #tpu.memory_space<vmem>>) attributes {dimension_semantics = [#tpu.dimension_semantics<parallel>, #tpu.dimension_semantics<arbitrary>], iteration_bounds = array<i64: 1, 1>, scalar_prefetch = 0 : i64, scratch_operands = 0 : i64, tpu.core_type = #tpu.core_type<tc>, window_params = [{transform_indices = @transform_0, window_bounds = array<i64: 16, 128>}, {transform_indices = @transform_1, window_bounds = array<i64: 16, 128>}, {transform_indices = @transform_2, window_bounds = array<i64: 8, 128>}]} {
    %c0_i32 = arith.constant 0 : i32
    %0 = arith.cmpi eq, %arg1, %c0_i32 : i32
    %1 = arith.extui %0 : i1 to i32
    %c0_i32_0 = arith.constant 0 : i32
    %2 = arith.cmpi ne, %1, %c0_i32_0 : i32
    scf.if %2 {
      %cst_9 = arith.constant 0.000000e+00 : f32
      %22 = vector.broadcast %cst_9 : f32 to vector<8x128xf32>
      %c0_10 = arith.constant 0 : index
      %c0_11 = arith.constant 0 : index
      %23 = vector.load %arg4[%c0_10, %c0_11] : memref<8x128xf32, #tpu.memory_space<vmem>>, vector<8x128xf32>
      tpu.vector_store %arg4[%c0_10, %c0_11], %22 {strides = array<i32>} : memref<8x128xf32, #tpu.memory_space<vmem>>, vector<8x128xf32>,
    } else {
    }
    %cst = arith.constant 0.000000e+00 : f32
    %3 = vector.broadcast %cst : f32 to vector<8x128xf32>
    %c0_i32_1 = arith.constant 0 : i32
    %c16_i32 = arith.constant 16 : i32
    %4 = arith.muli %c0_i32_1, %c16_i32 : i32
    %5 = tpu.assume_multiple %4, 16 : i32
    %6 = arith.index_cast %5 : i32 to index
    %c0 = arith.constant 0 : index
    %7 = vector.load %arg2[%6, %c0] : memref<16x128xf32, #tpu.memory_space<vmem>>, vector<16x128xf32>
    %8 = arith.index_cast %5 : i32 to index
    %c0_2 = arith.constant 0 : index
    %9 = vector.load %arg3[%8, %c0_2] : memref<16x128xf32, #tpu.memory_space<vmem>>, vector<16x128xf32>
    %10 = math.log %7 : vector<16x128xf32>
    %11 = arith.mulf %7, %10 : vector<16x128xf32>
    %cst_3 = arith.constant 1.000000e+00 : f32
    %12 = vector.broadcast %cst_3 : f32 to vector<16x128xf32>
    %13 = arith.subf %12, %9 : vector<16x128xf32>
    %14 = math.log %13 : vector<16x128xf32>
    %15 = arith.addf %11, %14 : vector<16x128xf32>
    %16 = vector.shape_cast %15 : vector<16x128xf32> to vector<2x8x128xf32>
    %cst_4 = arith.constant dense<0.000000e+00> : vector<8x128xf32>
    %17 = vector.multi_reduction <add>, %16, %cst_4 [0] : vector<2x8x128xf32> to vector<8x128xf32>
    %18 = arith.addf %3, %17 : vector<8x128xf32>
    %c1_i32 = arith.constant 1 : i32
    %c0_5 = arith.constant 0 : index
    %c0_6 = arith.constant 0 : index
    %19 = vector.load %arg4[%c0_5, %c0_6] : memref<8x128xf32, #tpu.memory_space<vmem>>, vector<8x128xf32>
    %20 = arith.addf %19, %18 : vector<8x128xf32>
    %c0_7 = arith.constant 0 : index
    %c0_8 = arith.constant 0 : index
    %21 = vector.load %arg4[%c0_7, %c0_8] : memref<8x128xf32, #tpu.memory_space<vmem>>, vector<8x128xf32>
    tpu.vector_store %arg4[%c0_7, %c0_8], %20 {strides = array<i32>} : memref<8x128xf32, #tpu.memory_space<vmem>>, vector<8x128xf32>,
    return
  }
  func.func @transform_0(%arg0: i32, %arg1: i32) -> (i32, i32) {
    %c1_i32 = arith.constant 1 : i32
    %0 = arith.muli %arg0, %c1_i32 : i32
    %1 = arith.addi %0, %arg1 : i32
    %c0_i32 = arith.constant 0 : i32
    %c0_i32_0 = arith.constant 0 : i32
    return %1, %c0_i32 : i32, i32
  }
  func.func @transform_1(%arg0: i32, %arg1: i32) -> (i32, i32) {
    %c1_i32 = arith.constant 1 : i32
    %0 = arith.muli %arg0, %c1_i32 : i32
    %1 = arith.addi %0, %arg1 : i32
    %c0_i32 = arith.constant 0 : i32
    %c0_i32_0 = arith.constant 0 : i32
    return %1, %c0_i32 : i32, i32
  }
  func.func @transform_2(%arg0: i32, %arg1: i32) -> (i32, i32) {
    %c0_i32 = arith.constant 0 : i32
    %c0_i32_0 = arith.constant 0 : i32
    return %arg0, %c0_i32 : i32, i32
  }
}

</mosaic_0001>

<bundles_post_ra>
// kernel: tpu_custom_call.1
= control target key start
LH: loop header
LB: loop body
LE: loop exit
PB: predicated region body
PF: predicated region fallthrough
CT: control target
= control target key end

     0   :  { %7 = vsyncpa [#allocation3], 0  ;;  %s205_s0 = inlined_call_operand.hbm [shape: f32[16,128], index: 0, kind: input, shape index: {}]   ;;  %s206_s1 = inlined_call_operand.hbm [shape: f32[16,128], index: 1, kind: input, shape index: {}]   ;;  %s207_s2 = inlined_call_operand.hbm [shape: f32[8,128], index: 2, kind: output, shape index: {}]  }
   0x1   :  { %8 = vsyncpa [#allocation6], 0 }
   0x2   :  { %9 = vsyncpa [#allocation4], 0  ;;  %s176_s9 = smov [#allocation2]  }
   0x3   :  { %s19_s10 = sshll.u32 %s176_s9, 4  ;;  %s20_s10 = int_to_ptr.vmem [resolvable:$true] %s19_s10 }
   0x4   :  { %s118_s11 = scalar_lea.vmem %s20_s10, 256  ;;  %p123_p1 = scmp.lt.s32.totalorder %s20_s10, %s20_s10 }
   0x5   :  { %p119_p0 = scmp.ne.s32.totalorder %s20_s10, %s118_s11  ;;  %p124_p2 = scmp.lt.s32.totalorder %s118_s11, %s118_s11 }
   0x7   :  { %p125_p3 = por %p124_p2, %p123_p1 }
   0x9   :  { %p126_p4 = pnand %p125_p3, %p119_p0 }
   0xb   :  { %129 = shalt.err (!%p126_p4)
}
   0xc   :  { %s177_s12 = smov 128   ;;  %s178_s13 = smov 8  }
   0xd   :  { %25 = dma.hbm_to_vmem [thread:$0]  %s205_s0, 256, %s20_s10, [#allocation3], %s177_s12, %s177_s12, %s178_s13  }
   0xe   :  { %s179_s16 = smov [#allocation5]  }
   0xf   :  { %s35_s17 = sshll.u32 %s179_s16, 4  ;;  %s36_s17 = int_to_ptr.vmem [resolvable:$true] %s35_s17 }
  0x10   :  { %s138_s18 = scalar_lea.vmem %s36_s17, 256  ;;  %p143_p6 = scmp.lt.s32.totalorder %s36_s17, %s36_s17 }
  0x11   :  { %p139_p5 = scmp.ne.s32.totalorder %s36_s17, %s138_s18  ;;  %p144_p7 = scmp.lt.s32.totalorder %s138_s18, %s138_s18 }
  0x13   :  { %p145_p8 = por %p144_p7, %p143_p6 }
  0x15   :  { %p146_p9 = pnand %p145_p8, %p139_p5 }
  0x17   :  { %149 = shalt.err (!%p146_p9)
}
  0x18   :  { %41 = dma.hbm_to_vmem [thread:$0]  %s206_s1, 256, %s36_s17, [#allocation6], %s177_s12, %s177_s12, %s178_s13  }
  0x19   :  { %170 = dma.done.wait [#allocation3], 256  }
  0x1a   :  { %171 = vsyncadd [#allocation3], 4294967040 }
  0x1b   :  { %172 = dma.done.wait [#allocation6], 256  }
  0x1c   :  { %173 = vsyncadd [#allocation6], 4294967040  ;;  %v57_v0 = vld [vmem:[#allocation2] sm:$0xff]  ;;  %v58_v1 = vld [vmem:[#allocation2 + $0x8] sm:$0xff]  ;;  %s180_s0 = smov [#allocation7]  }
  0x1d   :  { %v59_v2 = vld [vmem:[#allocation5] sm:$0xff]  ;;  %v60_v3 = vld [vmem:[#allocation5 + $0x8] sm:$0xff]  ;;  %102 = vlog2.f32 %v57_v0  ;;  %s86_s1 = sshll.u32 %s180_s0, 4  ;;  %s87_s1 = int_to_ptr.vmem [resolvable:$true] %s86_s1 }
  0x1e   :  { %v67_v4 = vsub.f32 1.0, %v59_v2  ;;  %104 = vlog2.f32 %v58_v1  ;;  %v68_v5 = vsub.f32 1.0, %v60_v3  ;;  %s150_s21 = scalar_lea.vmem %s87_s1, 128  ;;  %p155_p11 = scmp.lt.s32.totalorder %s87_s1, %s87_s1 }
  0x1f   :  { %p151_p10 = scmp.ne.s32.totalorder %s87_s1, %s150_s21  ;;  %p156_p12 = scmp.lt.s32.totalorder %s150_s21, %s150_s21 }
  0x20   :  { %106 = vlog2.f32 %v67_v4 }
  0x21   :  { %108 = vlog2.f32 %v68_v5  ;;  %p157_p13 = por %p156_p12, %p155_p11 }
  0x23   :  { %p158_p0 = pnand %p157_p13, %p151_p10 }
  0x2a   :  { %v103_v6 = vpop.eup %102 }
  0x2b   :  { %v105_v7 = vpop.eup %104  ;;  %v62_v8 = vmul.f32 0.6931472, %v103_v6 }
  0x2c   :  { %v64_v10 = vmul.f32 0.6931472, %v105_v7 }
  0x2d   :  { %v107_v9 = vpop.eup %106  ;;  %v65_v12 = vmul.f32 %v62_v8, %v57_v0 }
  0x2e   :  { %v109_v11 = vpop.eup %108  ;;  %v70_v13 = vmul.f32 0.6931472, %v107_v9  ;;  %v66_v14 = vmul.f32 %v64_v10, %v58_v1 }
  0x2f   :  { %v72_v15 = vmul.f32 0.6931472, %v109_v11 }
  0x30   :  { %v73_v16 = vadd.f32 %v70_v13, %v65_v12 }
  0x31   :  { %v74_v17 = vadd.f32 %v72_v15, %v66_v14 }
  0x33   :  { %v75_v18 = vadd.f32 %v74_v17, %v73_v16 }
  0x35   :  { %79 = vst [vmem:[#allocation7] sm:$0xff] %v75_v18 }
  0x36   :  { %161 = shalt.err (!%p158_p0)
}
  0x37   :  { %89 = dma.vmem_to_hbm [thread:$0]  %s87_s1, 128, %s207_s2, [#allocation4]  }
  0x38   :  { %174 = dma.done.wait [#allocation4], 128  }
  0x39   :  { %175 = vsyncadd [#allocation4], 4294967168 }
  0x3a   :  { %93 = vsyncpa [#allocation3], 1 }
  0x3b   :  { %94 = vsyncpa [#allocation6], 1 }
  0x3c   :  { %95 = vsyncpa [#allocation4], 1 }

</bundles_post_ra>
